<compile_context>
chip_gen: v5e
topology: v5e:2x2
jax: 0.10.0
libtpu: 0.0.40
codegen_flags: <defaults>
</compile_context>

<pallas_src>
import numpy as np
from functools import lru_cache

import jax
import jax.numpy as jnp
from jax.experimental import pallas as pl
from jax.experimental.pallas import tpu as pltpu

MLP_IN = 32
MLP_HID = 64
MLP_OUT = 9 * 5 + 1 * 5 + 32 * 16 + 32      # 594
MLP_OUT_PAD = 640                            # 5*128 -> lane-dense output store

# (hin==win, hout==wout, stride) for the five depthwise 3x3 convs (all pad=1)
_LAYERS = ((28, 28, 1), (28, 28, 1), (28, 14, 2), (14, 7, 2), (7, 4, 2))
_N_CONST = 3 * len(_LAYERS) + 1


# ----------------------------- MLP (FunctionGenerator hot path) ----------------
def _mlp_kernel(x_ref, w1_ref, b1_ref, w2_ref, b2_ref, w3_ref, b3_ref, o_ref):
    h = jnp.dot(x_ref[...], w1_ref[...], preferred_element_type=jnp.float32) + b1_ref[...]
    h = jnp.maximum(h, 0.0)
    h = jnp.dot(h, w2_ref[...], preferred_element_type=jnp.float32) + b2_ref[...]
    h = jnp.maximum(h, 0.0)
    o_ref[...] = jnp.dot(h, w3_ref[...], preferred_element_type=jnp.float32) + b3_ref[...]


def mlp_forward(params, x):
    B = x.shape[0]
    if B > 128 and B % 128 == 0:
        tb, grid = 128, (B // 128,)
    else:
        tb, grid = B, (1,)
    return pl.pallas_call(
        _mlp_kernel,
        grid=grid,
        in_specs=[
            pl.BlockSpec((tb, MLP_IN), lambda i: (i, 0)),
            pl.BlockSpec((MLP_IN, MLP_HID), lambda i: (0, 0)),
            pl.BlockSpec((1, MLP_HID), lambda i: (0, 0)),
            pl.BlockSpec((MLP_HID, MLP_HID), lambda i: (0, 0)),
            pl.BlockSpec((1, MLP_HID), lambda i: (0, 0)),
            pl.BlockSpec((MLP_HID, MLP_OUT_PAD), lambda i: (0, 0)),
            pl.BlockSpec((1, MLP_OUT_PAD), lambda i: (0, 0)),
        ],
        out_specs=pl.BlockSpec((tb, MLP_OUT_PAD), lambda i: (i, 0)),
        out_shape=jax.ShapeDtypeStruct((B, MLP_OUT_PAD), jnp.float32),
        compiler_params=pltpu.CompilerParams(dimension_semantics=("parallel",)),
    )(x, params["w1"], params["b1"], params["w2"], params["b2"],
      params["w3p"], params["b3p"])


# ----------------------------- output column permutation -----------------------
def _output_permutation():
    """perm[new_col] = original MLP output column, giving the layout
    [w1..w5 (45) | b1..b5 (5) | w6 in (tap, out-ch) order (512) | b6 (32)]."""
    w_cols, b_cols = [], []
    off = 0
    for _ in range(5):
        w_cols.append(np.arange(off, off + 9)); off += 9
        b_cols.append(np.arange(off, off + 1)); off += 1
    w6_off = off
    off += 512
    b6_cols = np.arange(off, off + 32)
    t_idx, oc_idx = np.meshgrid(np.arange(16), np.arange(32), indexing="ij")
    w6_cols = (w6_off + oc_idx * 16 + t_idx).reshape(-1)   # new pos = t*32 + oc
    return np.concatenate(w_cols + b_cols + [w6_cols, b6_cols]).astype(np.int32)


def init_params(key):
    ks = jax.random.split(key, 6)

    def linear(kw, kb, fan_in, fan_out):
        bound = 1.0 / np.sqrt(fan_in)                      # PyTorch Linear default init
        w = jax.random.uniform(kw, (fan_in, fan_out), jnp.float32, -bound, bound)
        b = jax.random.uniform(kb, (1, fan_out), jnp.float32, -bound, bound)
        return w, b

    w1, b1 = linear(ks[0], ks[1], MLP_IN, MLP_HID)
    w2, b2 = linear(ks[2], ks[3], MLP_HID, MLP_HID)
    w3, b3 = linear(ks[4], ks[5], MLP_HID, MLP_OUT)
    perm = jnp.asarray(_output_permutation())
    pad_w = jnp.zeros((MLP_HID, MLP_OUT_PAD - MLP_OUT), jnp.float32)
    pad_b = jnp.zeros((1, MLP_OUT_PAD - MLP_OUT), jnp.float32)
    w3p = jnp.concatenate([w3[:, perm], pad_w], axis=1)    # pre-permuted + lane-padded
    b3p = jnp.concatenate([b3[:, perm], pad_b], axis=1)
    return {"w1": w1, "b1": b1, "w2": w2, "b2": b2, "w3p": w3p, "b3p": b3p}


def function_generator_forward(params, x):
    """Pallas MLP -> generated DynamicFunction parameters (contiguous slices only)."""
    t = mlp_forward(params, x)                   # (B, 640), columns pre-permuted
    return {"w15": t[:, 0:45],                   # 5 layers x 9 taps (kh*3+kw)
            "b15": t[:, 45:50],                  # 5 per-layer biases
            "w6":  t[:, 50:562],                 # conv6 weights, col = tap*32 + out_ch
            "b6":  t[:, 562:594]}                # conv6 biases


# ----------------------------- conv constants (host precomputed) ---------------
@lru_cache(maxsize=None)
def _conv_constants_np(n):
    """0/1 select matrices for a block of n groups, built once on the host."""
    consts = []
    for (hin, hout, s) in _LAYERS:
        # width shift/stride select, block-diagonal over groups: (3, n*hin, n*hout)
        bm = np.zeros((3, n * hin, n * hout), np.float32)
        for dj in range(3):
            for j in range(hout):
                c = s * j + dj - 1
                if 0 <= c < hin:
                    for g in range(n):
                        bm[dj, g * hin + c, g * hout + j] = 1.0
        # height shift/stride select, shared across groups: (3, hout, hin)
        am = np.zeros((3, hout, hin), np.float32)
        for di in range(3):
            for i in range(hout):
                r = s * i + di - 1
                if 0 <= r < hin:
                    am[di, i, r] = 1.0
        # per-group scalar -> per-group output-column broadcast: (n, n*hout)
        er = np.zeros((n, n * hout), np.float32)
        for g in range(n):
            er[g, g * hout:(g + 1) * hout] = 1.0
        consts += [bm, am, er]
    # conv6 gather: (n*4, 4*n), maps X[p, g*4+q] -> Xsel[p, q*n+g]
    gs = np.zeros((n * 4, 4 * n), np.float32)
    for g in range(n):
        for q in range(4):
            gs[g * 4 + q, q * n + g] = 1.0
    consts.append(gs)
    return tuple(consts)


# ----------------------------- DynamicFunction conv kernel ---------------------
def _dyn_conv_kernel(*refs):
    img_ref, w15_ref, b15_ref, w6_ref, b6_ref = refs[0:5]
    crefs = refs[5:-1]                 # 15 per-layer constants + conv6 gather
    out_ref = refs[-1]
    n = out_ref.shape[-1]              # groups per block (column-stacked)

    x = img_ref[...].astype(jnp.float32)       # (28, n*28), x[:, g*28+c] = img_g[:, c]
    w15 = w15_ref[...]                          # (45, n)
    b15 = b15_ref[...]                          # (5, n)

    for l, (hin, hout, s) in enumerate(_LAYERS):
        bm_ref, am_ref, er_ref = crefs[3 * l], crefs[3 * l + 1], crefs[3 * l + 2]
        er = er_ref[...]                                                  # (n, n*hout)
        # per-group tap weights / biases broadcast over each group's output columns
        wrow = jnp.dot(w15[l * 9:(l + 1) * 9, :], er,
                       preferred_element_type=jnp.float32)                # (9, n*hout)
        brow = jnp.dot(b15[l:l + 1, :], er,
                       preferred_element_type=jnp.float32)                # (1, n*hout)
        # width taps for all n groups at once (block-diag select on the MXU)
        ys = [jnp.dot(x, bm_ref[dj], preferred_element_type=jnp.float32)
              for dj in range(3)]                                          # 3 x (hin, n*hout)
        acc = None
        for di in range(3):
            z = (wrow[di * 3 + 0:di * 3 + 1, :] * ys[0]
                 + wrow[di * 3 + 1:di * 3 + 2, :] * ys[1]
                 + wrow[di * 3 + 2:di * 3 + 3, :] * ys[2])                 # (hin, n*hout)
            part = jnp.dot(am_ref[di], z, preferred_element_type=jnp.float32)
            acc = part if acc is None else acc + part                      # (hout, n*hout)
        x = jnp.maximum(acc + brow, 0.0)

    # conv6: 4x4 "valid" conv, 32 output channels per group
    gs_ref = crefs[-1]
    xsel = jnp.dot(x, gs_ref[...], preferred_element_type=jnp.float32)     # (4, 4*n)
    acc6 = b6_ref[...].astype(jnp.float32)                                 # (32, n)
    for p in range(4):
        for q in range(4):
            t = p * 4 + q
            xr = xsel[p:p + 1, q * n:(q + 1) * n]                          # (1, n)
            acc6 = acc6 + xr * w6_ref[t * 32:(t + 1) * 32, :]              # (32, n)
    out_ref[...] = acc6


def dynamic_function_forward(dyn, x, g_blk=8):
    """Pallas equivalent of DynamicFunction.forward; returns (B*32, 1, 1)."""
    B = dyn["w15"].shape[0]
    n = min(g_blk, B)                          # groups per grid step
    bg = -(-B // n)                            # number of group blocks
    Bp = bg * n

    def pad(a):
        if Bp == B:
            return a
        return jnp.pad(a, ((0, Bp - B),) + ((0, 0),) * (a.ndim - 1))

    img = pad(jnp.reshape(x, (B, 28, 28)).astype(jnp.float32))
    # column-stack the n groups of each block: (bg, 28, n*28)
    img_cs = img.reshape(bg, n, 28, 28).transpose(0, 2, 1, 3).reshape(bg, 28, n * 28)

    def blockify(a):                            # (B, F) -> (bg, F, n)
        F = a.shape[1]
        return pad(a).reshape(bg, n, F).transpose(0, 2, 1)

    w15t = blockify(dyn["w15"])                 # (bg, 45, n)
    b15t = blockify(dyn["b15"])                 # (bg, 5, n)
    w6t = blockify(dyn["w6"])                   # (bg, 512, n)  rows = tap*32 + out_ch
    b6t = blockify(dyn["b6"])                   # (bg, 32, n)

    consts = [jnp.asarray(c) for c in _conv_constants_np(n)]

    def _blk_spec(shape):
        return pl.BlockSpec((None,) + shape, lambda i: (i, 0, 0))

    def _const_spec(arr):
        return pl.BlockSpec(arr.shape, lambda i, nd=arr.ndim: (0,) * nd)

    in_specs = [
        _blk_spec((28, n * 28)),                # image block (column-stacked groups)
        _blk_spec((45, n)),                     # 3x3 weights
        _blk_spec((5, n)),                      # biases
        _blk_spec((512, n)),                    # conv6 weights
        _blk_spec((32, n)),                     # conv6 biases
    ] + [_const_spec(c) for c in consts]        # resident constants (index 0 always)

    out = pl.pallas_call(
        _dyn_conv_kernel,
        grid=(bg,),
        in_specs=in_specs,
        out_specs=_blk_spec((32, n)),
        out_shape=jax.ShapeDtypeStruct((bg, 32, n), jnp.float32),
        compiler_params=pltpu.CompilerParams(dimension_semantics=("parallel",)),
    )(img_cs, w15t, b15t, w6t, b6t, *consts)

    out = out.transpose(0, 2, 1).reshape(Bp, 32)[:B]        # (B, 32): [group, out_ch]
    return out.reshape(B * 32, 1, 1)                         # matches torch layout


if __name__ == "__main__":
    key = jax.random.PRNGKey(0)
    k_param, k_x, k_img = jax.random.split(key, 3)
    B = 2
    params = init_params(k_param)
    x = jax.random.normal(k_x, (B, MLP_IN), dtype=jnp.float32)

    # FunctionGenerator.forward: MLP (Pallas kernel) -> generated conv params
    # TODO(synk): PyTorch returns an nn.Module (DynamicFunction); here we return its
    # parameter tensors and apply them with dynamic_function_forward below.
    dyn = function_generator_forward(params, x)
    jax.tree_util.tree_map(jax.block_until_ready, dyn)

    # Apply the generated DynamicFunction (dependent class) to an image input.
    img = jax.random.normal(k_img, (B, 28, 28), dtype=jnp.float32)
    y = dynamic_function_forward(dyn, img)
    jax.block_until_ready(y)
    assert y.shape == (B * 32, 1, 1)
    print("KERNEL_OK")
</pallas_src>

<mosaic_0001>
module attributes {stable_mosaic.version = 11 : i64} {
  func.func @_mlp_kernel(%arg0: i32, %arg1: memref<2x32xf32, #tpu.memory_space<vmem>>, %arg2: memref<32x64xf32, #tpu.memory_space<vmem>>, %arg3: memref<1x64xf32, #tpu.memory_space<vmem>>, %arg4: memref<64x64xf32, #tpu.memory_space<vmem>>, %arg5: memref<1x64xf32, #tpu.memory_space<vmem>>, %arg6: memref<64x640xf32, #tpu.memory_space<vmem>>, %arg7: memref<1x640xf32, #tpu.memory_space<vmem>>, %arg8: memref<2x640xf32, #tpu.memory_space<vmem>>) attributes {dimension_semantics = [#tpu.dimension_semantics<parallel>], iteration_bounds = array<i64: 1>, scalar_prefetch = 0 : i64, scratch_operands = 0 : i64, tpu.core_type = #tpu.core_type<tc>, window_params = [{transform_indices = @transform_0, window_bounds = array<i64: 2, 32>}, {pipeline_mode = #tpu.pipeline_mode<synchronous>, transform_indices = @transform_1, window_bounds = array<i64: 32, 64>}, {pipeline_mode = #tpu.pipeline_mode<synchronous>, transform_indices = @transform_2, window_bounds = array<i64: 1, 64>}, {pipeline_mode = #tpu.pipeline_mode<synchronous>, transform_indices = @transform_3, window_bounds = array<i64: 64, 64>}, {pipeline_mode = #tpu.pipeline_mode<synchronous>, transform_indices = @transform_4, window_bounds = array<i64: 1, 64>}, {pipeline_mode = #tpu.pipeline_mode<synchronous>, transform_indices = @transform_5, window_bounds = array<i64: 64, 640>}, {pipeline_mode = #tpu.pipeline_mode<synchronous>, transform_indices = @transform_6, window_bounds = array<i64: 1, 640>}, {transform_indices = @transform_7, window_bounds = array<i64: 2, 640>}]} {
    %c0 = arith.constant 0 : index
    %c0_0 = arith.constant 0 : index
    %0 = vector.load %arg1[%c0, %c0_0] : memref<2x32xf32, #tpu.memory_space<vmem>>, vector<2x32xf32>
    %c0_1 = arith.constant 0 : index
    %c0_2 = arith.constant 0 : index
    %1 = vector.load %arg2[%c0_1, %c0_2] : memref<32x64xf32, #tpu.memory_space<vmem>>, vector<32x64xf32>
    %cst = arith.constant dense<0.000000e+00> : vector<2x64xf32>
    %2 = tpu.matmul %0, %1, %cst {dimension_numbers = #tpu.dot_dimension_numbers<[1], [0], [0], [1], [0, 0, 1, 1], [], []>} : vector<2x32xf32>, vector<32x64xf32>, vector<2x64xf32> -> vector<2x64xf32>
    %c0_3 = arith.constant 0 : index
    %c0_4 = arith.constant 0 : index
    %3 = vector.load %arg3[%c0_3, %c0_4] : memref<1x64xf32, #tpu.memory_space<vmem>>, vector<1x64xf32>
    %4 = vector.broadcast %3 : vector<1x64xf32> to vector<2x64xf32>
    %5 = arith.addf %2, %4 : vector<2x64xf32>
    %cst_5 = arith.constant 0.000000e+00 : f32
    %6 = vector.broadcast %cst_5 : f32 to vector<2x64xf32>
    %7 = arith.maximumf %5, %6 : vector<2x64xf32>
    %c0_6 = arith.constant 0 : index
    %c0_7 = arith.constant 0 : index
    %8 = vector.load %arg4[%c0_6, %c0_7] : memref<64x64xf32, #tpu.memory_space<vmem>>, vector<64x64xf32>
    %cst_8 = arith.constant dense<0.000000e+00> : vector<2x64xf32>
    %9 = tpu.matmul %7, %8, %cst_8 {dimension_numbers = #tpu.dot_dimension_numbers<[1], [0], [0], [1], [0, 0, 1, 1], [], []>} : vector<2x64xf32>, vector<64x64xf32>, vector<2x64xf32> -> vector<2x64xf32>
    %c0_9 = arith.constant 0 : index
    %c0_10 = arith.constant 0 : index
    %10 = vector.load %arg5[%c0_9, %c0_10] : memref<1x64xf32, #tpu.memory_space<vmem>>, vector<1x64xf32>
    %11 = vector.broadcast %10 : vector<1x64xf32> to vector<2x64xf32>
    %12 = arith.addf %9, %11 : vector<2x64xf32>
    %cst_11 = arith.constant 0.000000e+00 : f32
    %13 = vector.broadcast %cst_11 : f32 to vector<2x64xf32>
    %14 = arith.maximumf %12, %13 : vector<2x64xf32>
    %c0_12 = arith.constant 0 : index
    %c0_13 = arith.constant 0 : index
    %15 = vector.load %arg6[%c0_12, %c0_13] : memref<64x640xf32, #tpu.memory_space<vmem>>, vector<64x640xf32>
    %cst_14 = arith.constant dense<0.000000e+00> : vector<2x640xf32>
    %16 = tpu.matmul %14, %15, %cst_14 {dimension_numbers = #tpu.dot_dimension_numbers<[1], [0], [0], [1], [0, 0, 1, 1], [], []>} : vector<2x64xf32>, vector<64x640xf32>, vector<2x640xf32> -> vector<2x640xf32>
    %c0_15 = arith.constant 0 : index
    %c0_16 = arith.constant 0 : index
    %17 = vector.load %arg7[%c0_15, %c0_16] : memref<1x640xf32, #tpu.memory_space<vmem>>, vector<1x640xf32>
    %18 = vector.broadcast %17 : vector<1x640xf32> to vector<2x640xf32>
    %19 = arith.addf %16, %18 : vector<2x640xf32>
    %c0_17 = arith.constant 0 : index
    %c0_18 = arith.constant 0 : index
    %20 = vector.load %arg8[%c0_17, %c0_18] : memref<2x640xf32, #tpu.memory_space<vmem>>, vector<2x640xf32>
    tpu.vector_store %arg8[%c0_17, %c0_18], %19 {strides = array<i32>} : memref<2x640xf32, #tpu.memory_space<vmem>>, vector<2x640xf32>,
    return
  }
  func.func @transform_0(%arg0: i32) -> (i32, i32) {
    %c0_i32 = arith.constant 0 : i32
    %c0_i32_0 = arith.constant 0 : i32
    return %arg0, %c0_i32 : i32, i32
  }
  func.func @transform_1(%arg0: i32) -> (i32, i32) {
    %c0_i32 = arith.constant 0 : i32
    %c0_i32_0 = arith.constant 0 : i32
    %c0_i32_1 = arith.constant 0 : i32
    return %c0_i32, %c0_i32_0 : i32, i32
  }
  func.func @transform_2(%arg0: i32) -> (i32, i32) {
    %c0_i32 = arith.constant 0 : i32
    %c0_i32_0 = arith.constant 0 : i32
    %c0_i32_1 = arith.constant 0 : i32
    return %c0_i32, %c0_i32_0 : i32, i32
  }
  func.func @transform_3(%arg0: i32) -> (i32, i32) {
    %c0_i32 = arith.constant 0 : i32
    %c0_i32_0 = arith.constant 0 : i32
    %c0_i32_1 = arith.constant 0 : i32
    return %c0_i32, %c0_i32_0 : i32, i32
  }
  func.func @transform_4(%arg0: i32) -> (i32, i32) {
    %c0_i32 = arith.constant 0 : i32
    %c0_i32_0 = arith.constant 0 : i32
    %c0_i32_1 = arith.constant 0 : i32
    return %c0_i32, %c0_i32_0 : i32, i32
  }
  func.func @transform_5(%arg0: i32) -> (i32, i32) {
    %c0_i32 = arith.constant 0 : i32
    %c0_i32_0 = arith.constant 0 : i32
    %c0_i32_1 = arith.constant 0 : i32
    return %c0_i32, %c0_i32_0 : i32, i32
  }
  func.func @transform_6(%arg0: i32) -> (i32, i32) {
    %c0_i32 = arith.constant 0 : i32
    %c0_i32_0 = arith.constant 0 : i32
    %c0_i32_1 = arith.constant 0 : i32
    return %c0_i32, %c0_i32_0 : i32, i32
  }
  func.func @transform_7(%arg0: i32) -> (i32, i32) {
    %c0_i32 = arith.constant 0 : i32
    %c0_i32_0 = arith.constant 0 : i32
    return %arg0, %c0_i32 : i32, i32
  }
}

</mosaic_0001>

<bundles_post_ra>
// kernel: tpu_custom_call.1
= control target key start
LH: loop header
LB: loop body
LE: loop exit
PB: predicated region body
PF: predicated region fallthrough
CT: control target
= control target key end

     0   :  { %12 = vsyncpa [#allocation3], 0  ;;  %s656_s0 = inlined_call_operand.hbm [shape: f32[2,32], index: 0, kind: input, shape index: {}]   ;;  %s657_s1 = inlined_call_operand.hbm [shape: f32[32,64], index: 1, kind: input, shape index: {}]   ;;  %s658_s2 = inlined_call_operand.hbm [shape: f32[1,64], index: 2, kind: input, shape index: {}]   ;;  %s659_s3 = inlined_call_operand.hbm [shape: f32[64,64], index: 3, kind: input, shape index: {}]   ;;  %s660_s4 = inlined_call_operand.hbm [shape: f32[1,64], index: 4, kind: input, shape index: {}]   ;;  %s661_s5 = inlined_call_operand.hbm [shape: f32[64,640], index: 5, kind: input, shape index: {}]   ;;  %s662_s6 = inlined_call_operand.vmem [shape: f32[1,640], index: 6, kind: input, shape index: {}]   ;;  %s663_s7 = inlined_call_operand.hbm [shape: f32[2,640], index: 7, kind: output, shape index: {}]  }
   0x1   :  { %13 = vsyncpa [#allocation6], 0 }
   0x2   :  { %14 = vsyncpa [#allocation9], 0 }
   0x3   :  { %15 = vsyncpa [#allocation12], 0  ;;  %s32_s26 = sshll.u32 %s657_s1, 4  ;;  %s33_s26 = int_to_ptr.hbm [resolvable:$true] %s32_s26 }
   0x4   :  { %16 = vsyncpa [#allocation4], 0  ;;  %s575_s27 = smov [#allocation5]   ;;  %s56_s8 = sshll.u32 %s659_s3, 4  ;;  %s57_s8 = int_to_ptr.hbm [resolvable:$true] %s56_s8 }
   0x5   :  { %s34_s28 = sshll.u32 %s575_s27, 4  ;;  %s576_s9 = smov 128   ;;  %s35_s28 = int_to_ptr.vmem [resolvable:$true] %s34_s28 }
   0x6   :  { %s577_s10 = smov 8   ;;  %s578_s11 = smov [#allocation8]  }
   0x7   :  { %40 = dma.hbm_to_vmem [thread:$0]  %s33_s26, 512, %s35_s28, [#allocation6], %s576_s9, %s576_s9, %s577_s10  }
   0x8   :  { %s58_s12 = sshll.u32 %s578_s11, 4  ;;  %s22_s15 = sshll.u32 %s656_s0, 4  ;;  %s59_s12 = int_to_ptr.vmem [resolvable:$true] %s58_s12  ;;  %s23_s15 = int_to_ptr.hbm [resolvable:$true] %s22_s15 }
   0x9   :  { %64 = dma.hbm_to_vmem [thread:$0]  %s57_s8, 1024, %s59_s12, [#allocation9], %s576_s9, %s576_s9, %s577_s10  }
   0xa   :  { %s46_s17 = sshll.u32 %s658_s2, 4  ;;  %s579_s18 = smov [#allocation2]   ;;  %s47_s17 = int_to_ptr.hbm [resolvable:$true] %s46_s17 }
   0xb   :  { %s24_s19 = sshll.u32 %s579_s18, 4  ;;  %s580_s3 = smov [#allocation7]   ;;  %s25_s19 = int_to_ptr.vmem [resolvable:$true] %s24_s19 }
   0xc   :  { %27 = dma.hbm_to_vmem [thread:$0]  %s23_s15, 32, %s25_s19, [#allocation3]  }
   0xd   :  { %s48_s20 = sshll.u32 %s580_s3, 4  ;;  %s70_s23 = sshll.u32 %s660_s4, 4  ;;  %s49_s20 = int_to_ptr.vmem [resolvable:$true] %s48_s20  ;;  %s71_s23 = int_to_ptr.hbm [resolvable:$true] %s70_s23 }
   0xe   :  { %51 = dma.hbm_to_vmem [thread:$0]  %s47_s17, 16, %s49_s20, [#allocation6]  }
   0xf   :  { %s80_s25 = sshll.u32 %s661_s5, 4  ;;  %s581_s26 = smov [#allocation10]   ;;  %s81_s25 = int_to_ptr.hbm [resolvable:$true] %s80_s25 }
  0x10   :  { %s72_s2 = sshll.u32 %s581_s26, 4  ;;  %s582_s27 = smov [#allocation11]   ;;  %s73_s2 = int_to_ptr.vmem [resolvable:$true] %s72_s2 }
  0x11   :  { %75 = dma.hbm_to_vmem [thread:$0]  %s71_s23, 16, %s73_s2, [#allocation9]  }
  0x12   :  { %s82_s28 = sshll.u32 %s582_s27, 4  ;;  %s583_s29 = smov 640   ;;  %s83_s28 = int_to_ptr.vmem [resolvable:$true] %s82_s28 }
  0x13   :  { %s584_s30 = smov 40  }
  0x14   :  { %88 = dma.hbm_to_vmem [thread:$0]  %s81_s25, 5120, %s83_s28, [#allocation12], %s583_s29, %s583_s29, %s584_s30  }
  0x15   :  { %565 = dma.done.wait [#allocation3], 32  }
  0x16   :  { %566 = vsyncadd [#allocation3], 4294967264 }
  0x17   :  { %567 = dma.done.wait [#allocation6], 528  }
  0x18   :  { %568 = vsyncadd [#allocation6], 4294966768 }
  0x19   :  { %569 = dma.done.wait [#allocation9], 1040  }
  0x1a   :  { %570 = vsyncadd [#allocation9], 4294966256 }
  0x1b   :  { %571 = dma.done.wait [#allocation12], 5120  }
  0x1c   :  { %572 = vsyncadd [#allocation12], 4294962176  ;;  %v119_v0 = vld [vmem:[#allocation5 + $0x18] sm:$0xff]  ;;  %v118_v1 = vld [vmem:[#allocation5 + $0x10] sm:$0xff]  ;;  %vm124_vm0 = vcmask 261120   ;;  %vm161_vm1 = vcmask 523264  }
  0x1d   :  { %140 = vmatpush.msra.mxu0 %v119_v0  ;;  %v156_v2 = vld [vmem:[#allocation8 + $0x38] sm:$0xff]  ;;  %v117_v3 = vld [vmem:[#allocation5 + $0x8] sm:$0xff]  ;;  %v155_v4 = vld [vmem:[#allocation8 + $0x30] sm:$0xff]  ;;  %vm350_vm2 = vcmask 1045508   ;;  %vm348_vm3 = vcmask 1041408   ;;  %vm352_vm4 = vcmask 1043456  }
  0x1e   :  { %173 = vmatpush.msra.mxu1 %v156_v2  ;;  %v154_v5 = vld [vmem:[#allocation8 + $0x28] sm:$0xff]  ;;  %v116_v6 = vld [vmem:[#allocation5] sm:$0xff]  ;;  %v115_v7 = vld [vmem:[#allocation2] sm:$0x3]  ;;  %s364_s11 = sshll.u32 %s663_s7, 4  ;;  %s365_s11 = int_to_ptr.hbm [resolvable:$true] %s364_s11 }
  0x1f   :  { %141 = vmatpush.msra.mxu0 %v118_v1  ;;  %v153_v8 = vld [vmem:[#allocation8 + $0x20] sm:$0xff]  ;;  %v152_v9 = vld [vmem:[#allocation8 + $0x18] sm:$0xff]  ;;  %v151_v10 = vld [vmem:[#allocation8 + $0x10] sm:$0xff] }
  0x20   :  { %174 = vmatpush.msra.mxu1 %v155_v4  ;;  %v150_v11 = vld [vmem:[#allocation8 + $0x8] sm:$0xff]  ;;  %v149_v12 = vld [vmem:[#allocation8] sm:$0xff]  ;;  %v216_v14 = vld [vmem:[#allocation11 + $0xf0] sm:$0xff] }
  0x21   :  { %142 = vmatpush.msra.mxu0 %v117_v3  ;;  %v221_v13 = vld [vmem:[#allocation11 + $0x118] sm:$0xff]  ;;  %v222_v15 = vld [vmem:[#allocation11 + $0x120] sm:$0xff]  ;;  %v223_v16 = vld [vmem:[#allocation11 + $0x128] sm:$0xff] }
  0x22   :  { %175 = vmatpush.msra.mxu1 %v154_v5  ;;  %249 = vmatpush.msra.mxu2 %v221_v13  ;;  %v211_v17 = vld [vmem:[#allocation11 + $0xc8] sm:$0xff]  ;;  %v224_v18 = vld [vmem:[#allocation11 + $0x130] sm:$0xff]  ;;  %v217_v19 = vld [vmem:[#allocation11 + $0xf8] sm:$0xff] }
  0x23   :  { %143 = vmatpush.msra.mxu0 %v116_v6  ;;  %269 = vmatpush.msra.mxu3 %v222_v15  ;;  %v206_v20 = vld [vmem:[#allocation11 + $0xa0] sm:$0xff]  ;;  %v219_v22 = vld [vmem:[#allocation11 + $0x108] sm:$0xff]  ;;  %v212_v23 = vld [vmem:[#allocation11 + $0xd0] sm:$0xff] }
  0x24   :  { %377 = vmatmul.msk.f32.vlgmr.msra.gmra.mxu0 %vm124_vm0, %v115_v7  ;;  %176 = vmatpush.msra.mxu1 %v153_v8  ;;  %v218_v21 = vld [vmem:[#allocation11 + $0x100] sm:$0xff]  ;;  %v213_v24 = vld [vmem:[#allocation11 + $0xd8] sm:$0xff]  ;;  %v207_v26 = vld [vmem:[#allocation11 + $0xa8] sm:$0xff] }
  0x25   :  { %289 = vmatpush.msrb.mxu0 %v223_v16  ;;  %250 = vmatpush.msra.mxu2 %v216_v14  ;;  %v214_v25 = vld [vmem:[#allocation11 + $0xe0] sm:$0xff]  ;;  %v208_v27 = vld [vmem:[#allocation11 + $0xb0] sm:$0xff]  ;;  %v201_v28 = vld [vmem:[#allocation11 + $0x78] sm:$0xff] }
  0x26   :  { %177 = vmatpush.msra.mxu1 %v152_v9  ;;  %270 = vmatpush.msra.mxu3 %v217_v19  ;;  %v209_v29 = vld [vmem:[#allocation11 + $0xb8] sm:$0xff]  ;;  %v202_v30 = vld [vmem:[#allocation11 + $0x80] sm:$0xff]  ;;  %v203_v31 = vld [vmem:[#allocation11 + $0x88] sm:$0xff] }
  0x27   :  { %290 = vmatpush.msrb.mxu0 %v218_v21  ;;  %251 = vmatpush.msra.mxu2 %v211_v17  ;;  %v196_v32 = vld [vmem:[#allocation11 + $0x50] sm:$0xff]  ;;  %v191_v34 = vld [vmem:[#allocation11 + $0x28] sm:$0xff]  ;;  %v186_v35 = vld [vmem:[#allocation11] sm:$0xff] }
  0x28   :  { %178 = vmatpush.msra.mxu1 %v151_v10  ;;  %271 = vmatpush.msra.mxu3 %v212_v23  ;;  %v204_v33 = vld [vmem:[#allocation11 + $0x90] sm:$0xff]  ;;  %v225_v36 = vld [vmem:[#allocation11 + $0x138] sm:$0xff]  ;;  %v198_v42 = vld [vmem:[#allocation11 + $0x60] sm:$0xff] }
  0x29   :  { %291 = vmatpush.msrb.mxu0 %v213_v24  ;;  %252 = vmatpush.msra.mxu2 %v206_v20  ;;  %v395_v37 = vld [vmem:[#allocation7] ss:$0 sm:$0xff]  ;;  %v199_v43 = vld [vmem:[#allocation11 + $0x68] sm:$0xff]  ;;  %v220_v44 = vld [vmem:[#allocation11 + $0x110] sm:$0xff] }
  0x2a   :  { %179 = vmatpush.msra.mxu1 %v150_v11  ;;  %272 = vmatpush.msra.mxu3 %v207_v26  ;;  %v197_v41 = vld [vmem:[#allocation11 + $0x58] sm:$0xff]  ;;  %v192_v45 = vld [vmem:[#allocation11 + $0x30] sm:$0xff]  ;;  %v194_v47 = vld [vmem:[#allocation11 + $0x40] sm:$0xff] }
  0x2b   :  { %292 = vmatpush.msrb.mxu0 %v208_v27  ;;  %253 = vmatpush.msra.mxu2 %v201_v28  ;;  %v193_v46 = vld [vmem:[#allocation11 + $0x38] sm:$0xff]  ;;  %v215_v48 = vld [vmem:[#allocation11 + $0xe8] sm:$0xff]  ;;  %v188_v50 = vld [vmem:[#allocation11 + $0x10] sm:$0xff] }
  0x2c   :  { %180 = vmatpush.msra.mxu1 %v149_v12  ;;  %273 = vmatpush.msra.mxu3 %v202_v30  ;;  %v187_v49 = vld [vmem:[#allocation11 + $0x8] sm:$0xff]  ;;  %v189_v51 = vld [vmem:[#allocation11 + $0x18] sm:$0xff]  ;;  %v210_v52 = vld [vmem:[#allocation11 + $0xc0] sm:$0xff] }
  0x2d   :  { %293 = vmatpush.msrb.mxu0 %v203_v31  ;;  %254 = vmatpush.msra.mxu2 %v196_v32  ;;  %v205_v53 = vld [vmem:[#allocation11 + $0x98] sm:$0xff]  ;;  %v200_v54 = vld [vmem:[#allocation11 + $0x70] sm:$0xff]  ;;  %v195_v55 = vld [vmem:[#allocation11 + $0x48] sm:$0xff] }
  0x2e   :  { %309 = vmatpush.msrb.mxu1 %v224_v18  ;;  %274 = vmatpush.msra.mxu3 %v197_v41  ;;  %v190_v56 = vld [vmem:[#allocation11 + $0x20] sm:$0xff]  ;;  %v396_v57 = vld [vmem:[#allocation10] ss:$0 sm:$0xff] }
  0x2f   :  { %255 = vmatpush.msra.mxu2 %v191_v34  ;;  %294 = vmatpush.msrb.mxu0 %v198_v42  ;;  %v226_v61 = vld [vmem:[%s662_s6] sm:$0x1f]  ;;  %s585_s6 = smov [#allocation13]  }
  0x30   :  { %310 = vmatpush.msrb.mxu1 %v219_v22  ;;  %275 = vmatpush.msra.mxu3 %v192_v45  ;;  %v230_v62 = vperm.slane %v226_v61, 2  ;;  %v231_v63 = vperm.slane %v226_v61, 3  ;;  %v229_v4 = vperm.slane %v226_v61, 1  ;;  %v228_v5 = vperm.slane %v226_v61, 0  ;;  %s362_s8 = sshll.u32 %s585_s6, 4  ;;  %s363_s8 = int_to_ptr.vmem [resolvable:$true] %s362_s8 }
  0x31   :  { %256 = vmatpush.msra.mxu2 %v186_v35  ;;  %295 = vmatpush.msrb.mxu0 %v193_v46  ;;  %v232_v15 = vperm.slane %v226_v61, 4 }
  0x32   :  { %311 = vmatpush.msrb.mxu1 %v214_v25  ;;  %276 = vmatpush.msra.mxu3 %v187_v49 }
  0x33   :  { %329 = vmatpush.msrb.mxu2 %v225_v36  ;;  %296 = vmatpush.msrb.mxu0 %v188_v50 }
  0x34   :  { %312 = vmatpush.msrb.mxu1 %v209_v29 }
  0x35   :  { %330 = vmatpush.msrb.mxu2 %v220_v44 }
  0x36   :  { %313 = vmatpush.msrb.mxu1 %v204_v33 }
  0x37   :  { %331 = vmatpush.msrb.mxu2 %v215_v48 }
  0x38   :  { %314 = vmatpush.msrb.mxu1 %v199_v43 }
  0x39   :  { %332 = vmatpush.msrb.mxu2 %v210_v52 }
  0x3a   :  { %315 = vmatpush.msrb.mxu1 %v194_v47 }
  0x3b   :  { %333 = vmatpush.msrb.mxu2 %v205_v53 }
  0x3c   :  { %316 = vmatpush.msrb.mxu1 %v189_v51 }
  0x3d   :  { %334 = vmatpush.msrb.mxu2 %v200_v54 }
  0x3f   :  { %335 = vmatpush.msrb.mxu2 %v195_v55 }
  0x41   :  { %336 = vmatpush.msrb.mxu2 %v190_v56 }
  0xa1   :  { %v145_v38 = vpop.f32.mrf.mxu0 }
  0xa2   :  { %v146_v39 = vadd.f32 %v395_v37, %v145_v38 }
  0xa4   :  { %v148_v40 = vmax.f32 %v146_v39, 0.0 }
  0xa6   :  { %378 = vmatmul.msk.f32.vlgmr.msra.gmra.mxu1 %vm161_vm1, %v148_v40 }
 0x123   :  { %v182_v58 = vpop.f32.mrf.mxu1 }
 0x124   :  { %v183_v59 = vadd.f32 %v396_v57, %v182_v58 }
 0x126   :  { %v185_v60 = vmax.f32 %v183_v59, 0.0 }
 0x128   :  { %379 = vmatmul.msk.f32.vlgmr.msra.gmra.mxu2 %vm161_vm1, %v185_v60  ;;  %380 = vmatmul.msk.f32.vlgmr.msra.gmra.mxu3 %vm161_vm1, %v185_v60 }
 0x129   :  { %381 = vmatmul.msk.f32.vlgmr.msrb.gmra.mxu0 %vm161_vm1, %v185_v60  ;;  %382 = vmatmul.msk.f32.vlgmr.msrb.gmra.mxu1 %vm161_vm1, %v185_v60 }
 0x130   :  { %383 = vmatmul.msk.f32.vlgmr.msrb.gmra.mxu2 %vm161_vm1, %v185_v60 }
 0x1a6   :  { %v298_v0 = vpop.f32.mrf.mxu0  ;;  %v318_v1 = vpop.f32.mrf.mxu1 }
 0x1a7   :  { %v299_v2 = vadd.f32 %v298_v0, %v230_v62  ;;  %v319_v3 = vadd.f32 %v318_v1, %v231_v63 }
 0x1a9   :  { %v346_v8 = vrot.slane %v299_v2, 4  ;;  %v347_v9 = vrot.slane %v319_v3, 2 }
 0x1ab   :  { %v258_v6 = vpop.f32.mrf.mxu2  ;;  %v278_v7 = vpop.f32.mrf.mxu3  ;;  %v351_v13 = vsel %vm350_vm2, %v346_v8, %v347_v9 }
 0x1ac   :  { %v279_v10 = vadd.f32 %v278_v7, %v229_v4  ;;  %v259_v11 = vadd.f32 %v258_v6, %v228_v5 }
 0x1ae   :  { %v345_v12 = vrot.slane %v279_v10, 6 }
 0x1b0   :  { %v349_v14 = vsel %vm348_vm3, %v259_v11, %v345_v12 }
 0x1b1   :  { %v353_v16 = vsel %vm352_vm4, %v349_v14, %v351_v13 }
 0x1b2   :  { %355 = vst [vmem:[#allocation13] sm:$0xff] %v353_v16 }
 0x1b3   :  { %v338_v17 = vpop.f32.mrf.mxu2 }
 0x1b4   :  { %v339_v18 = vadd.f32 %v338_v17, %v232_v15 }
 0x1b6   :  { %356 = vst [vmem:[#allocation13 + $0x8] sm:$0x3] %v339_v18 }
 0x1b7   :  { %367 = dma.vmem_to_hbm [thread:$0]  %s363_s8, 160, %s365_s11, [#allocation4]  }
 0x1b8   :  { %573 = dma.done.wait [#allocation4], 160  }
 0x1b9   :  { %574 = vsyncadd [#allocation4], 4294967136 }
 0x1ba   :  { %372 = vsyncpa [#allocation3], 1 }
 0x1bb   :  { %373 = vsyncpa [#allocation6], 1 }
 0x1bc   :  { %374 = vsyncpa [#allocation9], 1 }
 0x1bd   :  { %375 = vsyncpa [#allocation12], 1 }
 0x1be   :  { %376 = vsyncpa [#allocation4], 1 }

</bundles_post_ra>
